<compile_context>
chip_gen: v5e
topology: v5e:2x2
jax: 0.10.0
libtpu: 0.0.40
codegen_flags: <defaults>
</compile_context>

<pallas_src>
import math

import jax
import jax.numpy as jnp
from jax import lax
from jax.experimental import pallas as pl
from jax.experimental.pallas import tpu as pltpu


_ACC_ROWS = 8  # accumulator sublane height (one f32 vreg row)


def _round_up(x: int, m: int) -> int:
    return ((x + m - 1) // m) * m


def _cdiv(a: int, b: int) -> int:
    return (a + b - 1) // b


def _tpu_config():
    """(num_cores, per-input block byte budget, vmem limit) from the attached chip."""
    kind = ""
    try:
        kind = jax.devices()[0].device_kind.lower()
    except Exception:
        pass
    is_v7 = "v7" in kind
    # Chips where a size-2 "parallel" grid axis is split across two TensorCores
    # (megacore).  v5e / v6e have a single TensorCore -> don't pay for the extra
    # accumulator state / duplicate-tile handling there.
    two_core = is_v7 or ("v4" in kind) or ("v5p" in kind)
    num_cores = 2 if two_core else 1
    block_bytes = (4 << 20) if is_v7 else (2 << 20)   # per-input block DMA budget
    vmem_limit = (40 << 20) if is_v7 else (32 << 20)  # fits v5e scoped / v7x physical
    return num_cores, block_bytes, vmem_limit


def mel_spectrogram_loss(target_mel: jax.Array, predict_mel: jax.Array, **batch) -> jax.Array:
    """L1Loss(target_mel, predict_mel) with 'mean' reduction, computed in Pallas."""
    assert target_mel.shape == predict_mel.shape
    shape = target_mel.shape

    if len(shape) == 0:
        # Degenerate 0-d input: nothing to tile.
        return jnp.abs(target_mel.astype(jnp.float32) - predict_mel.astype(jnp.float32))

    T = int(shape[-1])
    R = int(math.prod(shape[:-1]))
    n_elems = R * T
    if n_elems == 0:
        # torch.nn.L1Loss on empty tensors yields NaN.
        return jnp.float32(jnp.nan)

    num_cores, block_bytes, vmem_limit = _tpu_config()

    # Free (contiguous, layout-preserving for mel-shaped inputs) reshape to a 2D slab:
    # rows -> sublanes, frames -> lanes.
    t2d = target_mel.reshape(R, T)
    p2d = predict_mel.reshape(R, T)

    itemsize = int(jnp.dtype(target_mel.dtype).itemsize)
    # Sublane alignment of the native tile for this dtype (f32: 8, bf16: 16, int8/fp8: 32).
    row_align = {4: 8, 2: 16, 1: 32}.get(itemsize, 8)

    # ---- lane tiling (only for very long T that would blow the byte budget) --------
    if row_align * T * itemsize > block_bytes and T > 128:
        lane_block = max(128, (block_bytes // (row_align * itemsize)) // 128 * 128)
        num_lane_tiles = _cdiv(T, lane_block)
    else:
        lane_block = T
        num_lane_tiles = 1
    lane_mask_possible = (num_lane_tiles * lane_block) > T

    # ---- dtype-aware byte-budgeted row tiling ---------------------------------------
    bytes_per_row = lane_block * itemsize
    budget_rows = max(row_align, (block_bytes // bytes_per_row) // row_align * row_align)
    block_rows = min(budget_rows, _round_up(R, row_align))
    num_row_tiles = _cdiv(R, block_rows)

    # Rebalance so the row tiles split evenly over the cores (no duplicate DMA / mask).
    tiles_per_core = _cdiv(num_row_tiles, num_cores)
    clamp_needed = (num_row_tiles % num_cores) != 0
    if clamp_needed and num_cores > 1:
        target_tiles = tiles_per_core * num_cores
        cand_rows = _round_up(_cdiv(R, target_tiles), row_align)
        if _cdiv(R, cand_rows) == target_tiles:
            block_rows = cand_rows
            num_row_tiles = target_tiles
            tiles_per_core = target_tiles // num_cores
            clamp_needed = False

    row_mask_possible = clamp_needed or (num_row_tiles * block_rows) > R
    inv_n = 1.0 / float(n_elems)

    def kernel(t_ref, p_ref, o_ref, acc_ref):
        c = pl.program_id(0)   # core axis ("parallel")
        i = pl.program_id(1)   # row-tile reduction axis ("arbitrary")
        j = pl.program_id(2)   # lane-tile reduction axis ("arbitrary")

        @pl.when((i == 0) & (j == 0))
        def _init():
            acc_ref[...] = jnp.zeros_like(acc_ref)

        diff = jnp.abs(
            t_ref[...].astype(jnp.float32) - p_ref[...].astype(jnp.float32)
        )

        def fold(x):
            # Splitting the sublane axis is layout-free; the axis-0 sum is pure
            # vreg-wise VPU adds into the resident (8, lane_block) accumulator.
            acc_ref[...] += jnp.sum(
                x.reshape(block_rows // _ACC_ROWS, _ACC_ROWS, lane_block), axis=0
            )

        if not (row_mask_possible or lane_mask_possible):
            fold(diff)
        else:
            # Only edge tiles (ragged tail rows/lanes, or a clamped duplicate tile)
            # pay for the iota/compare/select; interior tiles take the fast branch.
            conds = []
            if row_mask_possible:
                # Unclamped logical tile start so clamped duplicate tiles mask to zero.
                row_start = (c * tiles_per_core + i) * block_rows
                conds.append(row_start + block_rows > R)
            if lane_mask_possible:
                lane_start = j * lane_block
                conds.append(lane_start + lane_block > T)
            is_edge = conds[0]
            for extra in conds[1:]:
                is_edge = jnp.logical_or(is_edge, extra)

            @pl.when(jnp.logical_not(is_edge))
            def _interior():
                fold(diff)

            @pl.when(is_edge)
            def _edge():
                valid = None
                if row_mask_possible:
                    r_io = lax.broadcasted_iota(jnp.int32, (block_rows, lane_block), 0)
                    valid = (row_start + r_io) < R
                if lane_mask_possible:
                    l_io = lax.broadcasted_iota(jnp.int32, (block_rows, lane_block), 1)
                    lv = (lane_start + l_io) < T
                    valid = lv if valid is None else jnp.logical_and(valid, lv)
                fold(jnp.where(valid, diff, 0.0))

        @pl.when((i == pl.num_programs(1) - 1) & (j == pl.num_programs(2) - 1))
        def _finalize():
            # One cross-lane (XLU) reduce per core, off the hot VPU/DMA path; fold the
            # mean's 1/N here so only a 16-element sum remains outside the kernel.
            o_ref[...] = jnp.sum(acc_ref[...], axis=-1, keepdims=True) * jnp.float32(inv_n)

    if clamp_needed:
        def in_index(c, i, j):
            # Clamp so the DMA never targets a fully out-of-bounds block; the clamped
            # (duplicate) tile's contribution is killed by the edge mask above.
            return (jnp.minimum(c * tiles_per_core + i, num_row_tiles - 1), j)
    else:
        def in_index(c, i, j):
            return (c * tiles_per_core + i, j)

    partials = pl.pallas_call(
        kernel,
        out_shape=jax.ShapeDtypeStruct((num_cores * _ACC_ROWS, 1), jnp.float32),
        grid_spec=pltpu.PrefetchScalarGridSpec(
            num_scalar_prefetch=0,
            grid=(num_cores, tiles_per_core, num_lane_tiles),
            in_specs=[
                pl.BlockSpec((block_rows, lane_block), in_index),
                pl.BlockSpec((block_rows, lane_block), in_index),
            ],
            # Same tiny output block per core across both reduction axes.
            out_specs=pl.BlockSpec((_ACC_ROWS, 1), lambda c, i, j: (c, 0)),
            scratch_shapes=[pltpu.VMEM((_ACC_ROWS, lane_block), jnp.float32)],
        ),
        compiler_params=pltpu.CompilerParams(
            dimension_semantics=("parallel", "arbitrary", "arbitrary"),
            vmem_limit_bytes=vmem_limit,
        ),
    )(t2d, p2d)

    # Each core's (8, 1) partial is already scaled by 1/N; one trivial reduce remains.
    return jnp.sum(partials)


if __name__ == "__main__":
    key = jax.random.PRNGKey(0)
    k1, k2, k3, k4, k5, k6 = jax.random.split(key, 6)

    # Case 1: nicely shaped mels [B=2, n_mels=8, T=128] (lane-aligned, no masking).
    t1 = jax.random.normal(k1, (2, 8, 128), dtype=jnp.float32)
    p1 = jax.random.normal(k2, (2, 8, 128), dtype=jnp.float32)
    loss1 = mel_spectrogram_loss(t1, p1)
    jax.block_until_ready(loss1)
    ref1 = jnp.mean(jnp.abs(t1 - p1))
    assert jnp.allclose(loss1, ref1, rtol=1e-5, atol=1e-6), (loss1, ref1)

    # Case 2: typical mel shape [B=2, n_mels=80, T=100] (T not a multiple of 128).
    t2 = jax.random.normal(k3, (2, 80, 100), dtype=jnp.float32)
    p2 = jax.random.normal(k4, (2, 80, 100), dtype=jnp.float32)
    loss2 = mel_spectrogram_loss(t2, p2)
    jax.block_until_ready(loss2)
    ref2 = jnp.mean(jnp.abs(t2 - p2))
    assert jnp.allclose(loss2, ref2, rtol=1e-5, atol=1e-6), (loss2, ref2)

    # Case 3: bf16 inputs (exercise the dtype-aware block budget / bf16 row alignment).
    t3 = jax.random.normal(k5, (2, 80, 96), dtype=jnp.bfloat16)
    p3 = jax.random.normal(k6, (2, 80, 96), dtype=jnp.bfloat16)
    loss3 = mel_spectrogram_loss(t3, p3)
    jax.block_until_ready(loss3)
    ref3 = jnp.mean(jnp.abs(t3.astype(jnp.float32) - p3.astype(jnp.float32)))
    assert jnp.allclose(loss3, ref3, rtol=1e-4, atol=1e-5), (loss3, ref3)

    print("KERNEL_OK")
</pallas_src>

<mosaic_0001>
module attributes {stable_mosaic.version = 11 : i64} {
  func.func @kernel(%arg0: i32, %arg1: i32, %arg2: i32, %arg3: memref<16x128xf32, #tpu.memory_space<vmem>>, %arg4: memref<16x128xf32, #tpu.memory_space<vmem>>, %arg5: memref<8x1xf32, #tpu.memory_space<vmem>>, %arg6: memref<8x128xf32, #tpu.memory_space<vmem>>) attributes {dimension_semantics = [#tpu.dimension_semantics<parallel>, #tpu.dimension_semantics<arbitrary>, #tpu.dimension_semantics<arbitrary>], iteration_bounds = array<i64: 1, 1, 1>, scalar_prefetch = 0 : i64, scratch_operands = 1 : i64, tpu.core_type = #tpu.core_type<tc>, window_params = [{transform_indices = @transform_0, window_bounds = array<i64: 16, 128>}, {transform_indices = @transform_1, window_bounds = array<i64: 16, 128>}, {transform_indices = @transform_2, window_bounds = array<i64: 8, 1>}]} {
    %c0_i32 = arith.constant 0 : i32
    %0 = arith.cmpi eq, %arg1, %c0_i32 : i32
    %c0_i32_0 = arith.constant 0 : i32
    %1 = arith.cmpi eq, %arg2, %c0_i32_0 : i32
    %2 = arith.andi %0, %1 : i1
    %3 = arith.extui %2 : i1 to i32
    %c0_i32_1 = arith.constant 0 : i32
    %4 = arith.cmpi ne, %3, %c0_i32_1 : i32
    scf.if %4 {
      %cst_12 = arith.constant 0.000000e+00 : f32
      %19 = vector.broadcast %cst_12 : f32 to vector<8x128xf32>
      %c0_13 = arith.constant 0 : index
      %c0_14 = arith.constant 0 : index
      %20 = vector.load %arg6[%c0_13, %c0_14] : memref<8x128xf32, #tpu.memory_space<vmem>>, vector<8x128xf32>
      tpu.vector_store %arg6[%c0_13, %c0_14], %19 {strides = array<i32>} : memref<8x128xf32, #tpu.memory_space<vmem>>, vector<8x128xf32>,
    } else {
    }
    %c0 = arith.constant 0 : index
    %c0_2 = arith.constant 0 : index
    %5 = vector.load %arg3[%c0, %c0_2] : memref<16x128xf32, #tpu.memory_space<vmem>>, vector<16x128xf32>
    %c0_3 = arith.constant 0 : index
    %c0_4 = arith.constant 0 : index
    %6 = vector.load %arg4[%c0_3, %c0_4] : memref<16x128xf32, #tpu.memory_space<vmem>>, vector<16x128xf32>
    %7 = arith.subf %5, %6 : vector<16x128xf32>
    %8 = math.absf %7 : vector<16x128xf32>
    %c0_5 = arith.constant 0 : index
    %c0_6 = arith.constant 0 : index
    %9 = vector.load %arg6[%c0_5, %c0_6] : memref<8x128xf32, #tpu.memory_space<vmem>>, vector<8x128xf32>
    %10 = vector.shape_cast %8 : vector<16x128xf32> to vector<2x8x128xf32>
    %cst = arith.constant dense<0.000000e+00> : vector<8x128xf32>
    %11 = vector.multi_reduction <add>, %10, %cst [0] : vector<2x8x128xf32> to vector<8x128xf32>
    %12 = arith.addf %9, %11 : vector<8x128xf32>
    %c0_7 = arith.constant 0 : index
    %c0_8 = arith.constant 0 : index
    %13 = vector.load %arg6[%c0_7, %c0_8] : memref<8x128xf32, #tpu.memory_space<vmem>>, vector<8x128xf32>
    tpu.vector_store %arg6[%c0_7, %c0_8], %12 {strides = array<i32>} : memref<8x128xf32, #tpu.memory_space<vmem>>, vector<8x128xf32>,
    %c0_i32_9 = arith.constant 0 : i32
    %14 = arith.cmpi eq, %arg1, %c0_i32_9 : i32
    %c0_i32_10 = arith.constant 0 : i32
    %15 = arith.cmpi eq, %arg2, %c0_i32_10 : i32
    %16 = arith.andi %14, %15 : i1
    %17 = arith.extui %16 : i1 to i32
    %c0_i32_11 = arith.constant 0 : i32
    %18 = arith.cmpi ne, %17, %c0_i32_11 : i32
    scf.if %18 {
      %c0_12 = arith.constant 0 : index
      %c0_13 = arith.constant 0 : index
      %19 = vector.load %arg6[%c0_12, %c0_13] : memref<8x128xf32, #tpu.memory_space<vmem>>, vector<8x128xf32>
      %cst_14 = arith.constant dense<0.000000e+00> : vector<8xf32>
      %20 = vector.multi_reduction <add>, %19, %cst_14 [1] : vector<8x128xf32> to vector<8xf32>
      %21 = vector.shape_cast %20 : vector<8xf32> to vector<8x1xf32>
      %cst_15 = arith.constant 4.8828125E-4 : f32
      %22 = vector.broadcast %cst_15 : f32 to vector<8x1xf32>
      %23 = arith.mulf %21, %22 : vector<8x1xf32>
      %c0_16 = arith.constant 0 : index
      %c0_17 = arith.constant 0 : index
      %24 = vector.load %arg5[%c0_16, %c0_17] : memref<8x1xf32, #tpu.memory_space<vmem>>, vector<8x1xf32>
      tpu.vector_store %arg5[%c0_16, %c0_17], %23 {strides = array<i32>} : memref<8x1xf32, #tpu.memory_space<vmem>>, vector<8x1xf32>,
    } else {
    }
    return
  }
  func.func @transform_0(%arg0: i32, %arg1: i32, %arg2: i32) -> (i32, i32) {
    %c1_i32 = arith.constant 1 : i32
    %0 = arith.muli %arg0, %c1_i32 : i32
    %1 = arith.addi %0, %arg1 : i32
    %c0_i32 = arith.constant 0 : i32
    return %1, %arg2 : i32, i32
  }
  func.func @transform_1(%arg0: i32, %arg1: i32, %arg2: i32) -> (i32, i32) {
    %c1_i32 = arith.constant 1 : i32
    %0 = arith.muli %arg0, %c1_i32 : i32
    %1 = arith.addi %0, %arg1 : i32
    %c0_i32 = arith.constant 0 : i32
    return %1, %arg2 : i32, i32
  }
  func.func @transform_2(%arg0: i32, %arg1: i32, %arg2: i32) -> (i32, i32) {
    %c0_i32 = arith.constant 0 : i32
    %c0_i32_0 = arith.constant 0 : i32
    return %arg0, %c0_i32 : i32, i32
  }
}

</mosaic_0001>

<bundles_post_ra>
// kernel: tpu_custom_call.1
= control target key start
LH: loop header
LB: loop body
LE: loop exit
PB: predicated region body
PF: predicated region fallthrough
CT: control target
= control target key end

     0   :  { %7 = vsyncpa [#allocation4], 0  ;;  %s172_s0 = inlined_call_operand.hbm [shape: f32[16,128], index: 0, kind: input, shape index: {}]   ;;  %s173_s1 = inlined_call_operand.hbm [shape: f32[16,128], index: 1, kind: input, shape index: {}]   ;;  %s174_s2 = inlined_call_operand.vmem [shape: f32[8,1], index: 2, kind: output, shape index: {}]  }
   0x1   :  { %s17_s11 = sshll.u32 %s172_s0, 4  ;;  %s18_s11 = int_to_ptr.hbm [resolvable:$true] %s17_s11 }
   0x2   :  { %8 = vsyncpa [#allocation6], 0  ;;  %s144_s12 = smov [#allocation3]   ;;  %s34_s16 = sshll.u32 %s173_s1, 4  ;;  %s35_s16 = int_to_ptr.hbm [resolvable:$true] %s34_s16 }
   0x3   :  { %s19_s13 = sshll.u32 %s144_s12, 4  ;;  %s145_s17 = smov 128   ;;  %s20_s13 = int_to_ptr.vmem [resolvable:$true] %s19_s13 }
   0x4   :  { %s146_s18 = smov 8   ;;  %s147_s19 = smov [#allocation5]  }
   0x5   :  { %25 = dma.hbm_to_vmem [thread:$0]  %s18_s11, 256, %s20_s13, [#allocation4], %s145_s17, %s145_s17, %s146_s18  }
   0x6   :  { %s36_s20 = sshll.u32 %s147_s19, 4  ;;  %s37_s20 = int_to_ptr.vmem [resolvable:$true] %s36_s20 }
   0x7   :  { %42 = dma.hbm_to_vmem [thread:$0]  %s35_s16, 256, %s37_s20, [#allocation6], %s145_s17, %s145_s17, %s146_s18  }
   0x8   :  { %140 = dma.done.wait [#allocation4], 256  }
   0x9   :  { %141 = vsyncadd [#allocation4], 4294967040 }
   0xa   :  { %142 = dma.done.wait [#allocation6], 256  }
   0xb   :  { %143 = vsyncadd [#allocation6], 4294967040  ;;  %v62_v0 = vld [vmem:[#allocation3] sm:$0xff]  ;;  %v63_v1 = vld [vmem:[#allocation3 + $0x8] sm:$0xff]  ;;  %vm80_vm0 = vcmask 7168  }
   0xc   :  { %v64_v2 = vld [vmem:[#allocation5] sm:$0xff]  ;;  %v65_v3 = vld [vmem:[#allocation5 + $0x8] sm:$0xff] }
   0xd   :  { %v66_v4 = vsub.f32 %v62_v0, %v64_v2  ;;  %v67_v5 = vsub.f32 %v63_v1, %v65_v3 }
   0xf   :  { %v68_v6 = vand.u32 2147483647, %v66_v4  ;;  %v69_v7 = vand.u32 2147483647, %v67_v5 }
  0x11   :  { %v71_v8 = vadd.f32 %v69_v7, %v68_v6 }
  0x13   :  { %77 = vadd.xlane.f32.xlu0 %v71_v8 }
  0x86   :  { %v78_v9 = vpop.xlane.xlu0 %77 }
  0x87   :  { %v79_v10 = vmul.f32 0.00048828125, %v78_v9 }
  0x89   :  { %81 = vst.msk [vmem:[%s174_s2] sm:$0xff] %vm80_vm0, %v79_v10 }
  0x8a   :  { %86 = vsyncpa [#allocation4], 1 }
  0x8b   :  { %87 = vsyncpa [#allocation6], 1 }

</bundles_post_ra>
